<compile_context>
chip_gen: v5e
topology: v5e:2x2
jax: 0.10.0
libtpu: 0.0.40
codegen_flags: <defaults>
</compile_context>

<pallas_src>
import math

import jax
import jax.numpy as jnp
from jax.experimental import pallas as pl
from jax.experimental.pallas import tpu as pltpu


def _add_pe_kernel(x_ref, pe_ref, o_ref):
    # x_ref: (tile_s, batch, d_model), pe_ref: (tile_s, d_model).
    # Broadcast pe over the batch axis inside the kernel (memory-bound add,
    # VPU/XLU slack makes the broadcast free); cast pins output dtype.
    pe = pe_ref[...][:, None, :]
    o_ref[...] = (x_ref[...] + pe).astype(o_ref.dtype)


def make_pe_buffer(d_model: int, max_len: int = 5000, dtype=jnp.float32):
    """Sinusoidal positional-encoding buffer, shape [max_len, 1, d_model].

    Matches the PyTorch module for even d_model; odd d_model is handled
    gracefully (the torch reference would raise a shape error there).
    """
    position = jnp.arange(max_len, dtype=jnp.float32)[:, None]            # [max_len, 1]
    div_term = jnp.exp(
        jnp.arange(0, d_model, 2, dtype=jnp.float32) * (-math.log(10000.0) / d_model)
    )                                                                     # [ceil(D/2)]
    angles = position * div_term                                          # [max_len, ceil(D/2)]
    pe = jnp.zeros((max_len, d_model), dtype=jnp.float32)
    pe = pe.at[:, 0::2].set(jnp.sin(angles))
    pe = pe.at[:, 1::2].set(jnp.cos(angles)[:, : d_model // 2])
    return pe[:, None, :].astype(dtype)                                   # [max_len, 1, d_model]


def _choose_tile_s(
    seq_len: int,
    batch: int,
    d_model: int,
    itemsize: int,
    budget_bytes: int = 24 * 1024 * 1024,     # pipelined VMEM budget (< 32 MiB limit)
    min_split_bytes: int = 4 * 1024 * 1024,   # force >=2 grid steps above this
) -> int:
    """Sequence-tile size: big tiles (amortize ~0.35us/step), VMEM-budgeted."""
    # Sub-32-bit dtypes pack along sublanes: 8 rows f32, 16 bf16, 32 int8/fp8.
    pack = 8 * max(1, 4 // max(1, itemsize))
    x_row = batch * d_model * itemsize
    pe_row = d_model * itemsize
    # Resident pipelined buffers: double-buffered x-in, out, pe tiles.
    per_row_vmem = 2 * (2 * x_row + pe_row)
    tile_s = max(1, budget_bytes // per_row_vmem)

    # Ensure at least 2 grid steps for megacore sharding when the problem is
    # big enough to matter (v7x: 2 TCs share the chip's HBM bandwidth).
    if seq_len * x_row > min_split_bytes:
        half = -(-seq_len // 2)           # ceil(seq_len / 2)
        half = -(-half // pack) * pack    # round up to the sublane pack
        tile_s = min(tile_s, half)

    if tile_s >= seq_len:
        return seq_len
    # (8,128) rule: pe block's second-to-last dim (tile_s) must be a multiple
    # of the sublane pack (itself a multiple of 8) or equal seq_len.
    tile_s = max(pack, (tile_s // pack) * pack)
    return int(min(tile_s, seq_len))


def positional_encoding_forward(
    x: jax.Array,
    pe: jax.Array,
    *,
    min_pallas_bytes: int = 256 * 1024,
) -> jax.Array:
    """
    x:  [seq_len, batch, d_model]
    pe: [max_len, 1, d_model]  (max_len >= seq_len)
    returns x + pe[:seq_len]   (dropout in eval mode -> identity)
    """
    seq_len, batch, d_model = x.shape
    if seq_len > pe.shape[0]:
        raise ValueError(
            f"seq_len={seq_len} exceeds positional-encoding max_len={pe.shape[0]}"
        )

    itemsize = x.dtype.itemsize
    # Squeeze pe to 2-D once in the wrapper (done once; 1/batch of x's size)
    # and cast once so the hot loop is a single same-dtype VPU add.
    pe2d = pe[:seq_len, 0, :].astype(x.dtype)                 # [seq_len, d_model]

    x_bytes = seq_len * batch * d_model * itemsize
    if x_bytes < min_pallas_bytes:
        # Tiny problem: custom-call launch + pipeline prologue dominates;
        # let XLA fuse the broadcast add directly.
        return x + pe2d[:, None, :]

    tile_s = _choose_tile_s(seq_len, batch, d_model, itemsize)
    grid = (pl.cdiv(seq_len, tile_s),)

    cost = pl.CostEstimate(
        flops=seq_len * batch * d_model,
        transcendentals=0,
        bytes_accessed=(2 * seq_len * batch * d_model + seq_len * d_model) * itemsize,
    )

    return pl.pallas_call(
        _add_pe_kernel,
        out_shape=jax.ShapeDtypeStruct((seq_len, batch, d_model), x.dtype),
        grid_spec=pltpu.PrefetchScalarGridSpec(
            num_scalar_prefetch=0,
            grid=grid,
            in_specs=[
                pl.BlockSpec((tile_s, batch, d_model), lambda i: (i, 0, 0)),
                pl.BlockSpec((tile_s, d_model), lambda i: (i, 0)),
            ],
            out_specs=pl.BlockSpec((tile_s, batch, d_model), lambda i: (i, 0, 0)),
        ),
        compiler_params=pltpu.CompilerParams(
            dimension_semantics=("parallel",),
            vmem_limit_bytes=32 * 1024 * 1024,
        ),
        cost_estimate=cost,
    )(x, pe2d)


if __name__ == "__main__":
    key = jax.random.PRNGKey(0)
    k0, k1, k2, k3 = jax.random.split(key, 4)

    def _check(x, pe, **kwargs):
        y = jax.block_until_ready(positional_encoding_forward(x, pe, **kwargs))
        ref = x + pe[: x.shape[0]].astype(x.dtype)
        assert y.shape == x.shape and y.dtype == x.dtype
        tol = 1e-5 if x.dtype == jnp.float32 else 2e-2
        assert jnp.allclose(y, ref, atol=tol, rtol=tol), "mismatch vs reference"

    # Case 1: tiny shape -> XLA-fused fallback path (no pallas launch).
    x = jax.random.normal(k0, (8, 2, 32), dtype=jnp.float32)
    _check(x, make_pe_buffer(32))

    # Case 2: small shape, Pallas path forced (single-step grid).
    x = jax.random.normal(k1, (64, 2, 128), dtype=jnp.float32)
    _check(x, make_pe_buffer(128), min_pallas_bytes=0)

    # Case 3: moderate shape, default Pallas path; >4 MiB so the grid is
    # split into >=2 "parallel" steps (v7x megacore sharding).
    x = jax.random.normal(k2, (4096, 2, 256), dtype=jnp.float32)
    _check(x, make_pe_buffer(256))

    # Case 4: bf16 activations (dtype-aware sublane packing), Pallas forced.
    x = jax.random.normal(k3, (128, 2, 128), dtype=jnp.float32).astype(jnp.bfloat16)
    _check(x, make_pe_buffer(128), min_pallas_bytes=0)

    print("KERNEL_OK")
</pallas_src>

<mosaic_0001>
module attributes {stable_mosaic.version = 11 : i64} {
  func.func @_add_pe_kernel(%arg0: i32, %arg1: memref<64x2x128xf32, #tpu.memory_space<vmem>>, %arg2: memref<64x128xf32, #tpu.memory_space<vmem>>, %arg3: memref<64x2x128xf32, #tpu.memory_space<vmem>>) attributes {dimension_semantics = [#tpu.dimension_semantics<parallel>], iteration_bounds = array<i64: 1>, scalar_prefetch = 0 : i64, scratch_operands = 0 : i64, tpu.core_type = #tpu.core_type<tc>, window_params = [{transform_indices = @transform_0, window_bounds = array<i64: 64, 2, 128>}, {transform_indices = @transform_1, window_bounds = array<i64: 64, 128>}, {transform_indices = @transform_2, window_bounds = array<i64: 64, 2, 128>}]} {
    %c0 = arith.constant 0 : index
    %c0_0 = arith.constant 0 : index
    %0 = vector.load %arg2[%c0, %c0_0] : memref<64x128xf32, #tpu.memory_space<vmem>>, vector<64x128xf32>
    %1 = vector.shape_cast %0 : vector<64x128xf32> to vector<64x1x128xf32>
    %c0_1 = arith.constant 0 : index
    %c0_2 = arith.constant 0 : index
    %c0_3 = arith.constant 0 : index
    %2 = vector.load %arg1[%c0_1, %c0_2, %c0_3] : memref<64x2x128xf32, #tpu.memory_space<vmem>>, vector<64x2x128xf32>
    %3 = vector.broadcast %1 : vector<64x1x128xf32> to vector<64x2x128xf32>
    %4 = arith.addf %2, %3 : vector<64x2x128xf32>
    %c0_4 = arith.constant 0 : index
    %c0_5 = arith.constant 0 : index
    %c0_6 = arith.constant 0 : index
    %5 = vector.load %arg3[%c0_4, %c0_5, %c0_6] : memref<64x2x128xf32, #tpu.memory_space<vmem>>, vector<64x2x128xf32>
    tpu.vector_store %arg3[%c0_4, %c0_5, %c0_6], %4 {strides = array<i32>} : memref<64x2x128xf32, #tpu.memory_space<vmem>>, vector<64x2x128xf32>,
    return
  }
  func.func @transform_0(%arg0: i32) -> (i32, i32, i32) {
    %c0_i32 = arith.constant 0 : i32
    %c0_i32_0 = arith.constant 0 : i32
    %c0_i32_1 = arith.constant 0 : i32
    return %arg0, %c0_i32, %c0_i32_0 : i32, i32, i32
  }
  func.func @transform_1(%arg0: i32) -> (i32, i32) {
    %c0_i32 = arith.constant 0 : i32
    %c0_i32_0 = arith.constant 0 : i32
    return %arg0, %c0_i32 : i32, i32
  }
  func.func @transform_2(%arg0: i32) -> (i32, i32, i32) {
    %c0_i32 = arith.constant 0 : i32
    %c0_i32_0 = arith.constant 0 : i32
    %c0_i32_1 = arith.constant 0 : i32
    return %arg0, %c0_i32, %c0_i32_0 : i32, i32, i32
  }
}

</mosaic_0001>

<bundles_post_ra>
// kernel: tpu_custom_call.1
= control target key start
LH: loop header
LB: loop body
LE: loop exit
PB: predicated region body
PF: predicated region fallthrough
CT: control target
= control target key end

     0   :  { %7 = vsyncpa [#allocation3], 0  ;;  %s588_s0 = inlined_call_operand.hbm [shape: f32[64,2,128], index: 0, kind: input, shape index: {}]   ;;  %s589_s1 = inlined_call_operand.hbm [shape: f32[64,128], index: 1, kind: input, shape index: {}]   ;;  %s590_s2 = inlined_call_operand.hbm [shape: f32[64,2,128], index: 2, kind: output, shape index: {}]  }
   0x1   :  { %8 = vsyncpa [#allocation6], 0 }
   0x2   :  { %9 = vsyncpa [#allocation4], 0  ;;  %s14_s11 = sshll.u32 %s588_s0, 4  ;;  %s541_s12 = smov [#allocation2]   ;;  %s15_s11 = int_to_ptr.hbm [resolvable:$true] %s14_s11 }
   0x3   :  { %s16_s13 = sshll.u32 %s541_s12, 4  ;;  %s27_s16 = sshll.u32 %s589_s1, 4  ;;  %s17_s13 = int_to_ptr.vmem [resolvable:$true] %s16_s13  ;;  %s28_s16 = int_to_ptr.hbm [resolvable:$true] %s27_s16 }
   0x4   :  { %s542_s17 = smov 32   ;;  %s543_s18 = smov 2  }
   0x5   :  { %22 = dma.hbm_to_vmem [thread:$0]  %s15_s11, 2048, %s17_s13, [#allocation3], %s542_s17, %s542_s17, %s543_s18  }
   0x6   :  { %s544_s19 = smov [#allocation5]   ;;  %s545_s21 = smov 128  }
   0x7   :  { %s29_s20 = sshll.u32 %s544_s19, 4  ;;  %s546_s0 = smov 8   ;;  %s30_s20 = int_to_ptr.vmem [resolvable:$true] %s29_s20 }
   0x8   :  { %35 = dma.hbm_to_vmem [thread:$0]  %s28_s16, 1024, %s30_s20, [#allocation6], %s545_s21, %s545_s21, %s546_s0  }
   0x9   :  { %535 = dma.done.wait [#allocation3], 2048  }
   0xa   :  { %536 = vsyncadd [#allocation3], 4294965248 }
   0xb   :  { %537 = dma.done.wait [#allocation6], 1024  }
   0xc   :  { %538 = vsyncadd [#allocation6], 4294966272  ;;  %v44_v0 = vld [vmem:[#allocation5] sm:$0xff]  ;;  %v120_v10 = vld [vmem:[#allocation2 + $0x8] sm:$0x3]  ;;  %s547_s1 = smov [#allocation7]  }
   0xd   :  { %v116_v1 = vld [vmem:[#allocation2] sm:$0x3]  ;;  %v117_v2 = vld [vmem:[#allocation2 + $0x2] sm:$0x3]  ;;  %v180_v3 = vperm.slane %v44_v0, 0  ;;  %v60_v4 = vrot.slane %v44_v0, 1 }
   0xe   :  { %v61_v5 = vrot.slane %v44_v0, 2  ;;  %v118_v6 = vld [vmem:[#allocation2 + $0x4] sm:$0x3]  ;;  %v62_v7 = vrot.slane %v44_v0, 3  ;;  %v119_v8 = vld [vmem:[#allocation2 + $0x6] sm:$0x3] }
   0xf   :  { %v63_v9 = vrot.slane %v44_v0, 4  ;;  %v64_v11 = vrot.slane %v44_v0, 5  ;;  %v308_v12 = vadd.f32 %v180_v3, %v116_v1  ;;  %v181_v13 = vperm.slane %v60_v4, 0  ;;  %v121_v16 = vld [vmem:[#allocation2 + $0xa] sm:$0x3]  ;;  %v46_v49 = vld [vmem:[#allocation5 + $0x10] sm:$0xff] }
  0x10   :  { %v182_v14 = vperm.slane %v61_v5, 0  ;;  %v183_v15 = vperm.slane %v62_v7, 0  ;;  %v65_v19 = vrot.slane %v44_v0, 6  ;;  %v66_v20 = vrot.slane %v44_v0, 7  ;;  %v45_v21 = vld [vmem:[#allocation5 + $0x8] sm:$0xff]  ;;  %s440_s22 = sshll.u32 %s547_s1, 4  ;;  %s441_s22 = int_to_ptr.vmem [resolvable:$true] %s440_s22 }
  0x11   :  { %v184_v17 = vperm.slane %v63_v9, 0  ;;  %v185_v18 = vperm.slane %v64_v11, 0  ;;  %372 = vst [vmem:[#allocation7] sm:$0x3] %v308_v12  ;;  %v309_v22 = vadd.f32 %v181_v13, %v117_v2  ;;  %v122_v25 = vld [vmem:[#allocation2 + $0xc] sm:$0x3] }
  0x12   :  { %v310_v23 = vadd.f32 %v182_v14, %v118_v6  ;;  %v311_v24 = vadd.f32 %v183_v15, %v119_v8  ;;  %v123_v26 = vld [vmem:[#allocation2 + $0xe] sm:$0x3]  ;;  %v186_v29 = vperm.slane %v65_v19, 0  ;;  %v187_v30 = vperm.slane %v66_v20, 0  ;;  %v124_v31 = vld [vmem:[#allocation2 + $0x10] sm:$0x3] }
  0x13   :  { %v312_v27 = vadd.f32 %v184_v17, %v120_v10  ;;  %v313_v28 = vadd.f32 %v185_v18, %v121_v16  ;;  %v125_v32 = vld [vmem:[#allocation2 + $0x12] sm:$0x3]  ;;  %373 = vst [vmem:[#allocation7 + $0x2] sm:$0x3] %v309_v22  ;;  %v188_v33 = vperm.slane %v45_v21, 0  ;;  %v67_v34 = vrot.slane %v45_v21, 1 }
  0x14   :  { %v68_v35 = vrot.slane %v45_v21, 2  ;;  %v126_v36 = vld [vmem:[#allocation2 + $0x14] sm:$0x3]  ;;  %v69_v37 = vrot.slane %v45_v21, 3  ;;  %374 = vst [vmem:[#allocation7 + $0x4] sm:$0x3] %v310_v23  ;;  %v314_v38 = vadd.f32 %v186_v29, %v122_v25  ;;  %v315_v42 = vadd.f32 %v187_v30, %v123_v26 }
  0x15   :  { %v127_v39 = vld [vmem:[#allocation2 + $0x16] sm:$0x3]  ;;  %v70_v40 = vrot.slane %v45_v21, 4  ;;  %v71_v41 = vrot.slane %v45_v21, 5  ;;  %375 = vst [vmem:[#allocation7 + $0x6] sm:$0x3] %v311_v24  ;;  %v316_v46 = vadd.f32 %v188_v33, %v124_v31 }
  0x16   :  { %v189_v43 = vperm.slane %v67_v34, 0  ;;  %v190_v44 = vperm.slane %v68_v35, 0  ;;  %v191_v45 = vperm.slane %v69_v37, 0  ;;  %376 = vst [vmem:[#allocation7 + $0x8] sm:$0x3] %v312_v27  ;;  %v72_v53 = vrot.slane %v45_v21, 6 }
  0x17   :  { %v128_v47 = vld [vmem:[#allocation2 + $0x18] sm:$0x3]  ;;  %v192_v48 = vperm.slane %v70_v40, 0  ;;  %377 = vst [vmem:[#allocation7 + $0xa] sm:$0x3] %v313_v28  ;;  %v193_v52 = vperm.slane %v71_v41, 0 }
  0x18   :  { %v317_v50 = vadd.f32 %v189_v43, %v125_v32  ;;  %v129_v51 = vld [vmem:[#allocation2 + $0x1a] sm:$0x3]  ;;  %378 = vst [vmem:[#allocation7 + $0xc] sm:$0x3] %v314_v38  ;;  %v318_v54 = vadd.f32 %v190_v44, %v126_v36  ;;  %v130_v55 = vld [vmem:[#allocation2 + $0x1c] sm:$0x3]  ;;  %v319_v58 = vadd.f32 %v191_v45, %v127_v39 }
  0x19   :  { %v73_v56 = vrot.slane %v45_v21, 7  ;;  %v196_v57 = vperm.slane %v46_v49, 0  ;;  %379 = vst [vmem:[#allocation7 + $0xe] sm:$0x3] %v315_v42  ;;  %v194_v59 = vperm.slane %v72_v53, 0  ;;  %v74_v61 = vrot.slane %v46_v49, 1 }
  0x1a   :  { %v131_v60 = vld [vmem:[#allocation2 + $0x1e] sm:$0x3]  ;;  %380 = vst [vmem:[#allocation7 + $0x10] sm:$0x3] %v316_v46  ;;  %v320_v62 = vadd.f32 %v192_v48, %v128_v47  ;;  %v132_v0 = vld [vmem:[#allocation2 + $0x20] sm:$0x3]  ;;  %v321_v2 = vadd.f32 %v193_v52, %v129_v51 }
  0x1b   :  { %v195_v63 = vperm.slane %v73_v56, 0  ;;  %v75_v1 = vrot.slane %v46_v49, 2  ;;  %381 = vst [vmem:[#allocation7 + $0x12] sm:$0x3] %v317_v50  ;;  %v133_v3 = vld [vmem:[#allocation2 + $0x22] sm:$0x3]  ;;  %v322_v6 = vadd.f32 %v194_v59, %v130_v55  ;;  %v324_v15 = vadd.f32 %v196_v57, %v132_v0 }
  0x1c   :  { %v197_v4 = vperm.slane %v74_v61, 0  ;;  %v76_v5 = vrot.slane %v46_v49, 3  ;;  %382 = vst [vmem:[#allocation7 + $0x14] sm:$0x3] %v318_v54  ;;  %v134_v7 = vld [vmem:[#allocation2 + $0x24] sm:$0x3] }
  0x1d   :  { %v198_v8 = vperm.slane %v75_v1, 0  ;;  %v77_v9 = vrot.slane %v46_v49, 4  ;;  %v572_v10 = vld [vmem:[#allocation5 + $0x18] sm:$0xff]  ;;  %383 = vst [vmem:[#allocation7 + $0x16] sm:$0x3] %v319_v58  ;;  %v323_v11 = vadd.f32 %v195_v63, %v131_v60  ;;  %v78_v14 = vrot.slane %v46_v49, 5 }
  0x1e   :  { %v135_v12 = vld [vmem:[#allocation2 + $0x26] sm:$0x3]  ;;  %v199_v13 = vperm.slane %v76_v5, 0  ;;  %384 = vst [vmem:[#allocation7 + $0x18] sm:$0x3] %v320_v62  ;;  %v79_v18 = vrot.slane %v46_v49, 6  ;;  %v325_v19 = vadd.f32 %v197_v4, %v133_v3 }
  0x1f   :  { %v136_v16 = vld [vmem:[#allocation2 + $0x28] sm:$0x3]  ;;  %v200_v17 = vperm.slane %v77_v9, 0  ;;  %385 = vst [vmem:[#allocation7 + $0x1a] sm:$0x3] %v321_v2  ;;  %v201_v21 = vperm.slane %v78_v14, 0  ;;  %v326_v23 = vadd.f32 %v198_v8, %v134_v7 }
  0x20   :  { %v137_v20 = vld [vmem:[#allocation2 + $0x2a] sm:$0x3]  ;;  %v80_v22 = vrot.slane %v46_v49, 7  ;;  %386 = vst [vmem:[#allocation7 + $0x1c] sm:$0x3] %v322_v6  ;;  %v202_v25 = vperm.slane %v79_v18, 0  ;;  %v327_v26 = vadd.f32 %v199_v13, %v135_v12 }
  0x21   :  { %v138_v24 = vld [vmem:[#allocation2 + $0x2c] sm:$0x3]  ;;  %387 = vst [vmem:[#allocation7 + $0x1e] sm:$0x3] %v323_v11  ;;  %v204_v28 = vperm.slane %v572_v10, 0  ;;  %v81_v29 = vrot.slane %v572_v10, 1  ;;  %v328_v30 = vadd.f32 %v200_v17, %v136_v16  ;;  %v329_v33 = vadd.f32 %v201_v21, %v137_v20 }
  0x22   :  { %v203_v27 = vperm.slane %v80_v22, 0  ;;  %388 = vst [vmem:[#allocation7 + $0x20] sm:$0x3] %v324_v15  ;;  %v139_v31 = vld [vmem:[#allocation2 + $0x2e] sm:$0x3]  ;;  %v82_v36 = vrot.slane %v572_v10, 2  ;;  %v330_v37 = vadd.f32 %v202_v25, %v138_v24 }
  0x23   :  { %v140_v32 = vld [vmem:[#allocation2 + $0x30] sm:$0x3]  ;;  %389 = vst [vmem:[#allocation7 + $0x22] sm:$0x3] %v325_v19  ;;  %v141_v34 = vld [vmem:[#allocation2 + $0x32] sm:$0x3] }
  0x24   :  { %v205_v35 = vperm.slane %v81_v29, 0  ;;  %390 = vst [vmem:[#allocation7 + $0x24] sm:$0x3] %v326_v23  ;;  %v142_v38 = vld [vmem:[#allocation2 + $0x34] sm:$0x3]  ;;  %v83_v39 = vrot.slane %v572_v10, 3  ;;  %v331_v41 = vadd.f32 %v203_v27, %v139_v31  ;;  %v332_v45 = vadd.f32 %v204_v28, %v140_v32 }
  0x25   :  { %v84_v40 = vrot.slane %v572_v10, 4  ;;  %391 = vst [vmem:[#allocation7 + $0x26] sm:$0x3] %v327_v26  ;;  %v206_v42 = vperm.slane %v82_v36, 0  ;;  %v143_v43 = vld [vmem:[#allocation2 + $0x36] sm:$0x3] }
  0x26   :  { %v85_v44 = vrot.slane %v572_v10, 5  ;;  %392 = vst [vmem:[#allocation7 + $0x28] sm:$0x3] %v328_v30  ;;  %v207_v46 = vperm.slane %v83_v39, 0  ;;  %v144_v47 = vld [vmem:[#allocation2 + $0x38] sm:$0x3]  ;;  %v333_v49 = vadd.f32 %v205_v35, %v141_v34 }
  0x27   :  { %v208_v48 = vperm.slane %v84_v40, 0  ;;  %393 = vst [vmem:[#allocation7 + $0x2a] sm:$0x3] %v329_v33  ;;  %v145_v50 = vld [vmem:[#allocation2 + $0x3a] sm:$0x3]  ;;  %v86_v52 = vrot.slane %v572_v10, 6  ;;  %v334_v53 = vadd.f32 %v206_v42, %v142_v38 }
  0x28   :  { %v209_v51 = vperm.slane %v85_v44, 0  ;;  %394 = vst [vmem:[#allocation7 + $0x2c] sm:$0x3] %v330_v37  ;;  %v146_v54 = vld [vmem:[#allocation2 + $0x3c] sm:$0x3]  ;;  %v87_v55 = vrot.slane %v572_v10, 7  ;;  %v335_v57 = vadd.f32 %v207_v46, %v143_v43 }
  0x29   :  { %v48_v56 = vld [vmem:[#allocation5 + $0x20] sm:$0xff]  ;;  %395 = vst [vmem:[#allocation7 + $0x2e] sm:$0x3] %v331_v41  ;;  %v210_v58 = vperm.slane %v86_v52, 0  ;;  %v147_v59 = vld [vmem:[#allocation2 + $0x3e] sm:$0x3]  ;;  %v336_v60 = vadd.f32 %v208_v48, %v144_v47 }
  0x2a   :  { %396 = vst [vmem:[#allocation7 + $0x30] sm:$0x3] %v332_v45  ;;  %v211_v61 = vperm.slane %v87_v55, 0  ;;  %v212_v62 = vperm.slane %v48_v56, 0  ;;  %v88_v63 = vrot.slane %v48_v56, 1  ;;  %v337_v0 = vadd.f32 %v209_v51, %v145_v50  ;;  %v49_v23 = vld [vmem:[#allocation5 + $0x28] sm:$0xff] }
  0x2b   :  { %397 = vst [vmem:[#allocation7 + $0x32] sm:$0x3] %v333_v49  ;;  %v148_v1 = vld [vmem:[#allocation2 + $0x40] sm:$0x3]  ;;  %v89_v2 = vrot.slane %v48_v56, 2  ;;  %v90_v3 = vrot.slane %v48_v56, 3  ;;  %v338_v4 = vadd.f32 %v210_v58, %v146_v54 }
  0x2c   :  { %398 = vst [vmem:[#allocation7 + $0x34] sm:$0x3] %v334_v53  ;;  %v149_v5 = vld [vmem:[#allocation2 + $0x42] sm:$0x3]  ;;  %v213_v6 = vperm.slane %v88_v63, 0  ;;  %v91_v7 = vrot.slane %v48_v56, 4  ;;  %v339_v8 = vadd.f32 %v211_v61, %v147_v59  ;;  %v340_v12 = vadd.f32 %v212_v62, %v148_v1 }
  0x2d   :  { %399 = vst [vmem:[#allocation7 + $0x36] sm:$0x3] %v335_v57  ;;  %v150_v9 = vld [vmem:[#allocation2 + $0x44] sm:$0x3]  ;;  %v214_v10 = vperm.slane %v89_v2, 0  ;;  %v215_v11 = vperm.slane %v90_v3, 0 }
  0x2e   :  { %400 = vst [vmem:[#allocation7 + $0x38] sm:$0x3] %v336_v60  ;;  %v151_v13 = vld [vmem:[#allocation2 + $0x46] sm:$0x3]  ;;  %v216_v14 = vperm.slane %v91_v7, 0  ;;  %v92_v15 = vrot.slane %v48_v56, 5  ;;  %v341_v16 = vadd.f32 %v213_v6, %v149_v5 }
  0x2f   :  { %401 = vst [vmem:[#allocation7 + $0x3a] sm:$0x3] %v337_v0  ;;  %v152_v17 = vld [vmem:[#allocation2 + $0x48] sm:$0x3]  ;;  %v93_v18 = vrot.slane %v48_v56, 6  ;;  %v94_v19 = vrot.slane %v48_v56, 7  ;;  %v342_v20 = vadd.f32 %v214_v10, %v150_v9  ;;  %v343_v24 = vadd.f32 %v215_v11, %v151_v13 }
  0x30   :  { %402 = vst [vmem:[#allocation7 + $0x3c] sm:$0x3] %v338_v4  ;;  %v153_v21 = vld [vmem:[#allocation2 + $0x4a] sm:$0x3]  ;;  %v217_v22 = vperm.slane %v92_v15, 0  ;;  %v344_v28 = vadd.f32 %v216_v14, %v152_v17  ;;  %v220_v30 = vperm.slane %v49_v23, 0 }
  0x31   :  { %403 = vst [vmem:[#allocation7 + $0x3e] sm:$0x3] %v339_v8  ;;  %v154_v25 = vld [vmem:[#allocation2 + $0x4c] sm:$0x3]  ;;  %v218_v26 = vperm.slane %v93_v18, 0  ;;  %v219_v27 = vperm.slane %v94_v19, 0 }
  0x32   :  { %404 = vst [vmem:[#allocation7 + $0x40] sm:$0x3] %v340_v12  ;;  %v155_v29 = vld [vmem:[#allocation2 + $0x4e] sm:$0x3]  ;;  %v95_v31 = vrot.slane %v49_v23, 1  ;;  %v345_v32 = vadd.f32 %v217_v22, %v153_v21  ;;  %v96_v34 = vrot.slane %v49_v23, 2 }
  0x33   :  { %405 = vst [vmem:[#allocation7 + $0x42] sm:$0x3] %v341_v16  ;;  %v156_v33 = vld [vmem:[#allocation2 + $0x50] sm:$0x3]  ;;  %v97_v35 = vrot.slane %v49_v23, 3  ;;  %v346_v36 = vadd.f32 %v218_v26, %v154_v25  ;;  %v98_v39 = vrot.slane %v49_v23, 4  ;;  %v347_v40 = vadd.f32 %v219_v27, %v155_v29 }
  0x34   :  { %406 = vst [vmem:[#allocation7 + $0x44] sm:$0x3] %v342_v20  ;;  %v157_v37 = vld [vmem:[#allocation2 + $0x52] sm:$0x3]  ;;  %v221_v38 = vperm.slane %v95_v31, 0  ;;  %v222_v42 = vperm.slane %v96_v34, 0  ;;  %v348_v44 = vadd.f32 %v220_v30, %v156_v33 }
  0x35   :  { %407 = vst [vmem:[#allocation7 + $0x46] sm:$0x3] %v343_v24  ;;  %v158_v41 = vld [vmem:[#allocation2 + $0x54] sm:$0x3]  ;;  %v223_v43 = vperm.slane %v97_v35, 0  ;;  %v224_v46 = vperm.slane %v98_v39, 0 }
  0x36   :  { %408 = vst [vmem:[#allocation7 + $0x48] sm:$0x3] %v344_v28  ;;  %v159_v45 = vld [vmem:[#allocation2 + $0x56] sm:$0x3]  ;;  %v99_v47 = vrot.slane %v49_v23, 5  ;;  %v349_v48 = vadd.f32 %v221_v38, %v157_v37  ;;  %v100_v50 = vrot.slane %v49_v23, 6  ;;  %v350_v52 = vadd.f32 %v222_v42, %v158_v41 }
  0x37   :  { %409 = vst [vmem:[#allocation7 + $0x4a] sm:$0x3] %v345_v32  ;;  %v160_v49 = vld [vmem:[#allocation2 + $0x58] sm:$0x3]  ;;  %v101_v51 = vrot.slane %v49_v23, 7  ;;  %v50_v55 = vld [vmem:[#allocation5 + $0x30] sm:$0xff]  ;;  %v351_v56 = vadd.f32 %v223_v43, %v159_v45 }
  0x38   :  { %410 = vst [vmem:[#allocation7 + $0x4c] sm:$0x3] %v346_v36  ;;  %v161_v53 = vld [vmem:[#allocation2 + $0x5a] sm:$0x3]  ;;  %v225_v54 = vperm.slane %v99_v47, 0  ;;  %v226_v58 = vperm.slane %v100_v50, 0  ;;  %v352_v60 = vadd.f32 %v224_v46, %v160_v49 }
  0x39   :  { %411 = vst [vmem:[#allocation7 + $0x4e] sm:$0x3] %v347_v40  ;;  %v162_v57 = vld [vmem:[#allocation2 + $0x5c] sm:$0x3]  ;;  %v227_v59 = vperm.slane %v101_v51, 0  ;;  %v228_v62 = vperm.slane %v50_v55, 0 }
  0x3a   :  { %412 = vst [vmem:[#allocation7 + $0x50] sm:$0x3] %v348_v44  ;;  %v163_v61 = vld [vmem:[#allocation2 + $0x5e] sm:$0x3]  ;;  %v102_v63 = vrot.slane %v50_v55, 1  ;;  %v353_v0 = vadd.f32 %v225_v54, %v161_v53  ;;  %v103_v2 = vrot.slane %v50_v55, 2  ;;  %v354_v4 = vadd.f32 %v226_v58, %v162_v57 }
  0x3b   :  { %413 = vst [vmem:[#allocation7 + $0x52] sm:$0x3] %v349_v48  ;;  %v164_v1 = vld [vmem:[#allocation2 + $0x60] sm:$0x3]  ;;  %v104_v3 = vrot.slane %v50_v55, 3  ;;  %v105_v7 = vrot.slane %v50_v55, 4  ;;  %v355_v8 = vadd.f32 %v227_v59, %v163_v61 }
  0x3c   :  { %414 = vst [vmem:[#allocation7 + $0x54] sm:$0x3] %v350_v52  ;;  %v165_v5 = vld [vmem:[#allocation2 + $0x62] sm:$0x3]  ;;  %v229_v6 = vperm.slane %v102_v63, 0  ;;  %v230_v10 = vperm.slane %v103_v2, 0  ;;  %v356_v12 = vadd.f32 %v228_v62, %v164_v1 }
  0x3d   :  { %415 = vst [vmem:[#allocation7 + $0x56] sm:$0x3] %v351_v56  ;;  %v166_v9 = vld [vmem:[#allocation2 + $0x64] sm:$0x3]  ;;  %v231_v11 = vperm.slane %v104_v3, 0  ;;  %v232_v14 = vperm.slane %v105_v7, 0 }
  0x3e   :  { %416 = vst [vmem:[#allocation7 + $0x58] sm:$0x3] %v352_v60  ;;  %v167_v13 = vld [vmem:[#allocation2 + $0x66] sm:$0x3]  ;;  %v106_v15 = vrot.slane %v50_v55, 5  ;;  %v357_v16 = vadd.f32 %v229_v6, %v165_v5  ;;  %v107_v18 = vrot.slane %v50_v55, 6  ;;  %v358_v20 = vadd.f32 %v230_v10, %v166_v9 }
  0x3f   :  { %417 = vst [vmem:[#allocation7 + $0x5a] sm:$0x3] %v353_v0  ;;  %v168_v17 = vld [vmem:[#allocation2 + $0x68] sm:$0x3]  ;;  %v108_v19 = vrot.slane %v50_v55, 7  ;;  %v51_v23 = vld [vmem:[#allocation5 + $0x38] sm:$0xff]  ;;  %v359_v24 = vadd.f32 %v231_v11, %v167_v13 }
  0x40   :  { %418 = vst [vmem:[#allocation7 + $0x5c] sm:$0x3] %v354_v4  ;;  %v169_v21 = vld [vmem:[#allocation2 + $0x6a] sm:$0x3]  ;;  %v233_v22 = vperm.slane %v106_v15, 0  ;;  %v234_v26 = vperm.slane %v107_v18, 0  ;;  %v360_v28 = vadd.f32 %v232_v14, %v168_v17 }
  0x41   :  { %419 = vst [vmem:[#allocation7 + $0x5e] sm:$0x3] %v355_v8  ;;  %v170_v25 = vld [vmem:[#allocation2 + $0x6c] sm:$0x3]  ;;  %v235_v27 = vperm.slane %v108_v19, 0  ;;  %v236_v30 = vperm.slane %v51_v23, 0 }
  0x42   :  { %420 = vst [vmem:[#allocation7 + $0x60] sm:$0x3] %v356_v12  ;;  %v171_v29 = vld [vmem:[#allocation2 + $0x6e] sm:$0x3]  ;;  %v109_v31 = vrot.slane %v51_v23, 1  ;;  %v361_v32 = vadd.f32 %v233_v22, %v169_v21  ;;  %v110_v34 = vrot.slane %v51_v23, 2  ;;  %v362_v36 = vadd.f32 %v234_v26, %v170_v25 }
  0x43   :  { %421 = vst [vmem:[#allocation7 + $0x62] sm:$0x3] %v357_v16  ;;  %v172_v33 = vld [vmem:[#allocation2 + $0x70] sm:$0x3]  ;;  %v111_v35 = vrot.slane %v51_v23, 3  ;;  %v112_v39 = vrot.slane %v51_v23, 4  ;;  %v363_v40 = vadd.f32 %v235_v27, %v171_v29 }
  0x44   :  { %422 = vst [vmem:[#allocation7 + $0x64] sm:$0x3] %v358_v20  ;;  %v173_v37 = vld [vmem:[#allocation2 + $0x72] sm:$0x3]  ;;  %v237_v38 = vperm.slane %v109_v31, 0  ;;  %v238_v42 = vperm.slane %v110_v34, 0  ;;  %v364_v44 = vadd.f32 %v236_v30, %v172_v33 }
  0x45   :  { %423 = vst [vmem:[#allocation7 + $0x66] sm:$0x3] %v359_v24  ;;  %v174_v41 = vld [vmem:[#allocation2 + $0x74] sm:$0x3]  ;;  %v239_v43 = vperm.slane %v111_v35, 0  ;;  %v240_v46 = vperm.slane %v112_v39, 0 }
  0x46   :  { %424 = vst [vmem:[#allocation7 + $0x68] sm:$0x3] %v360_v28  ;;  %v175_v45 = vld [vmem:[#allocation2 + $0x76] sm:$0x3]  ;;  %v113_v47 = vrot.slane %v51_v23, 5  ;;  %v365_v48 = vadd.f32 %v237_v38, %v173_v37  ;;  %v114_v50 = vrot.slane %v51_v23, 6  ;;  %v366_v52 = vadd.f32 %v238_v42, %v174_v41 }
  0x47   :  { %425 = vst [vmem:[#allocation7 + $0x6a] sm:$0x3] %v361_v32  ;;  %v176_v49 = vld [vmem:[#allocation2 + $0x78] sm:$0x3]  ;;  %v115_v51 = vrot.slane %v51_v23, 7  ;;  %v367_v55 = vadd.f32 %v239_v43, %v175_v45  ;;  %s442_s25 = sshll.u32 %s590_s2, 4  ;;  %s443_s25 = int_to_ptr.hbm [resolvable:$true] %s442_s25 }
  0x48   :  { %426 = vst [vmem:[#allocation7 + $0x6c] sm:$0x3] %v362_v36  ;;  %v177_v53 = vld [vmem:[#allocation2 + $0x7a] sm:$0x3]  ;;  %v241_v54 = vperm.slane %v113_v47, 0  ;;  %v242_v57 = vperm.slane %v114_v50, 0  ;;  %v368_v59 = vadd.f32 %v240_v46, %v176_v49 }
  0x49   :  { %427 = vst [vmem:[#allocation7 + $0x6e] sm:$0x3] %v363_v40  ;;  %v178_v56 = vld [vmem:[#allocation2 + $0x7c] sm:$0x3]  ;;  %v243_v58 = vperm.slane %v115_v51, 0 }
  0x4a   :  { %428 = vst [vmem:[#allocation7 + $0x70] sm:$0x3] %v364_v44  ;;  %v179_v60 = vld [vmem:[#allocation2 + $0x7e] sm:$0x3]  ;;  %v369_v61 = vadd.f32 %v241_v54, %v177_v53  ;;  %v370_v62 = vadd.f32 %v242_v57, %v178_v56 }
  0x4b   :  { %429 = vst [vmem:[#allocation7 + $0x72] sm:$0x3] %v365_v48  ;;  %v371_v63 = vadd.f32 %v243_v58, %v179_v60 }
  0x4c   :  { %430 = vst [vmem:[#allocation7 + $0x74] sm:$0x3] %v366_v52 }
  0x4d   :  { %431 = vst [vmem:[#allocation7 + $0x76] sm:$0x3] %v367_v55 }
  0x4e   :  { %432 = vst [vmem:[#allocation7 + $0x78] sm:$0x3] %v368_v59 }
  0x4f   :  { %433 = vst [vmem:[#allocation7 + $0x7a] sm:$0x3] %v369_v61 }
  0x50   :  { %434 = vst [vmem:[#allocation7 + $0x7c] sm:$0x3] %v370_v62 }
  0x51   :  { %435 = vst [vmem:[#allocation7 + $0x7e] sm:$0x3] %v371_v63 }
  0x52   :  { %448 = dma.vmem_to_hbm [thread:$0]  %s441_s22, 2048, %s443_s25, [#allocation4], %s542_s17, %s542_s17, %s543_s18  }
  0x53   :  { %539 = dma.done.wait [#allocation4], 2048  }
  0x54   :  { %540 = vsyncadd [#allocation4], 4294965248 }
  0x55   :  { %453 = vsyncpa [#allocation3], 1 }
  0x56   :  { %454 = vsyncpa [#allocation6], 1 }
  0x57   :  { %455 = vsyncpa [#allocation4], 1 }

</bundles_post_ra>
